<compile_context>
chip_gen: v6e
topology: v6e:2x2x1
jax: 0.10.0
libtpu: 0.0.40
codegen_flags: <defaults>
</compile_context>

<pallas_src>
import jax
import jax.numpy as jnp
from jax.experimental import pallas as pl
from jax.experimental.pallas import tpu as pltpu

# ----- problem sizes (synthetic, matching the module's shape structure) -----
STATE_DIM = 32          # env.state_dim
HIDDEN = 128
SERVERS = 4             # env.servers_number
CONTAINERS = 8          # env.containers_number
BATCH = 2

K_PAD = 128                      # STATE_DIM zero-padded to a full MXU contraction
HEAD_PAD = 128                   # fused (load + value) head padded to lane-dense width
LOAD_LANES = SERVERS * CONTAINERS
VALUE_LANE = LOAD_LANES          # value head lives in this lane of the fused output


def actor_critic_kernel(x_ref, w_ref, b_ref, out_ref):
    # x_ref : (TM, 128)       padded state tile
    # w_ref : (3, 128, 128)   [0]=w1 (rows 0..31 real), [1]=w2, [2]=fused head
    # b_ref : (3, 128)        [0]=b1, [1]=b2, [2]=fused head bias
    # out_ref: (TM, 128)      lanes 0..31 = sigmoid(load logits), lane 32 = value

    x = x_ref[...]

    # shared trunk: two Linear+ReLU layers (MXU matmuls + VPU elementwise)
    h = jnp.dot(x, w_ref[0], preferred_element_type=jnp.float32) + b_ref[0:1, :]
    h = jnp.maximum(h, 0.0)
    h = jnp.dot(h, w_ref[1], preferred_element_type=jnp.float32) + b_ref[1:2, :]
    h = jnp.maximum(h, 0.0)

    # fused head: one lane-dense matmul produces load logits + value together
    head = jnp.dot(h, w_ref[2], preferred_element_type=jnp.float32) + b_ref[2:3, :]

    # sigmoid only on the load lanes; value lane (and zero padding) stay linear
    lane = jax.lax.broadcasted_iota(jnp.int32, head.shape, 1)
    out_ref[...] = jnp.where(lane < LOAD_LANES, jax.nn.sigmoid(head), head)


def pack_params(params):
    """Pack the 8 per-layer params into 2 lane-dense tensors (1x weights, 1x biases)."""
    w1, b1, w2, b2, wl, bl, wv, bv = params

    w1p = jnp.zeros((HIDDEN, HIDDEN), jnp.float32).at[:STATE_DIM, :].set(w1)

    wh = jnp.zeros((HIDDEN, HEAD_PAD), jnp.float32)
    wh = wh.at[:, :LOAD_LANES].set(wl)
    wh = wh.at[:, VALUE_LANE:VALUE_LANE + 1].set(wv)

    bh = jnp.zeros((HEAD_PAD,), jnp.float32)
    bh = bh.at[:LOAD_LANES].set(bl.reshape(-1))
    bh = bh.at[VALUE_LANE].set(bv.reshape(()))

    w_packed = jnp.stack([w1p, w2, wh], axis=0)                           # (3,128,128)
    b_packed = jnp.stack([b1.reshape(-1), b2.reshape(-1), bh], axis=0)    # (3,128)
    return w_packed, b_packed


def actor_critic_forward(x, w_packed, b_packed):
    """x: (B, STATE_DIM) f32 -> (load_probs (B, SERVERS, CONTAINERS), value (B,))"""
    B = x.shape[0]

    # batch tile: sublane-aligned (>=8 rows); cap at 256 rows/tile for big batches
    if B > 256:
        TM = 256
    else:
        TM = max(8, -(-B // 8) * 8)
    B_pad = -(-B // TM) * TM

    # zero-pad batch rows and the state (K) dimension to full tiles
    x_pad = jnp.zeros((B_pad, K_PAD), jnp.float32).at[:B, :STATE_DIM].set(x)

    out = pl.pallas_call(
        actor_critic_kernel,
        out_shape=jax.ShapeDtypeStruct((B_pad, HEAD_PAD), jnp.float32),
        grid_spec=pltpu.PrefetchScalarGridSpec(
            num_scalar_prefetch=0,
            grid=(B_pad // TM,),
            in_specs=[
                pl.BlockSpec((TM, K_PAD), lambda i: (i, 0)),
                pl.BlockSpec((3, HIDDEN, HIDDEN), lambda i: (0, 0, 0)),
                pl.BlockSpec((3, HEAD_PAD), lambda i: (0, 0)),
            ],
            out_specs=pl.BlockSpec((TM, HEAD_PAD), lambda i: (i, 0)),
        ),
        compiler_params=pltpu.CompilerParams(
            dimension_semantics=("parallel",)),   # shards batch across TCs on v7x
    )(x_pad, w_packed, b_packed)

    head = out[:B]
    load_probs = head[:, :LOAD_LANES].reshape(B, SERVERS, CONTAINERS)
    value = head[:, VALUE_LANE]
    return load_probs, value


actor_critic_forward_jit = jax.jit(actor_critic_forward)


def init_params(key):
    """Deterministic synthetic weights with the module's shapes.

    PyTorch Linear stores weight as (out, in); we keep (in, out) so the kernel
    does x @ W directly (mathematically identical to x @ weight.T).
    """
    ks = jax.random.split(key, 8)
    scale = 0.1
    w1 = scale * jax.random.normal(ks[0], (STATE_DIM, HIDDEN), jnp.float32)
    b1 = scale * jax.random.normal(ks[1], (1, HIDDEN), jnp.float32)
    w2 = scale * jax.random.normal(ks[2], (HIDDEN, HIDDEN), jnp.float32)
    b2 = scale * jax.random.normal(ks[3], (1, HIDDEN), jnp.float32)
    # per-server load heads concatenated along the output axis:
    # column block s*CONTAINERS:(s+1)*CONTAINERS corresponds to load_head[s]
    wl = scale * jax.random.normal(ks[4], (HIDDEN, LOAD_LANES), jnp.float32)
    bl = scale * jax.random.normal(ks[5], (1, LOAD_LANES), jnp.float32)
    wv = scale * jax.random.normal(ks[6], (HIDDEN, 1), jnp.float32)
    bv = scale * jax.random.normal(ks[7], (1, 1), jnp.float32)
    return (w1, b1, w2, b2, wl, bl, wv, bv)


def reference_forward(x, params):
    """Pure-JAX reference for a correctness check."""
    w1, b1, w2, b2, wl, bl, wv, bv = params
    h = jnp.maximum(x @ w1 + b1, 0.0)
    h = jnp.maximum(h @ w2 + b2, 0.0)
    load = jax.nn.sigmoid(h @ wl + bl).reshape(x.shape[0], SERVERS, CONTAINERS)
    value = (h @ wv + bv).squeeze(-1)
    return load, value


if __name__ == "__main__":
    key = jax.random.PRNGKey(0)
    k_x, k_p = jax.random.split(key)
    x = jax.random.normal(k_x, (BATCH, STATE_DIM), jnp.float32)
    params = init_params(k_p)

    # pack once (weights stay pinned inside the jit; not re-packed per call)
    w_packed, b_packed = jax.block_until_ready(pack_params(params))

    load_probs, value = actor_critic_forward_jit(x, w_packed, b_packed)
    jax.block_until_ready((load_probs, value))

    # sanity checks vs pure-JAX reference
    ref_load, ref_value = reference_forward(x, params)
    assert load_probs.shape == (BATCH, SERVERS, CONTAINERS), load_probs.shape
    assert value.shape == (BATCH,), value.shape
    assert jnp.allclose(load_probs, ref_load, atol=1e-5, rtol=1e-5)
    assert jnp.allclose(value, ref_value, atol=1e-5, rtol=1e-5)

    print("KERNEL_OK")
</pallas_src>

<mosaic_0001>
module attributes {stable_mosaic.version = 11 : i64} {
  func.func @actor_critic_kernel(%arg0: i32, %arg1: memref<8x128xf32, #tpu.memory_space<vmem>>, %arg2: memref<3x128x128xf32, #tpu.memory_space<vmem>>, %arg3: memref<3x128xf32, #tpu.memory_space<vmem>>, %arg4: memref<8x128xf32, #tpu.memory_space<vmem>>) attributes {dimension_semantics = [#tpu.dimension_semantics<parallel>], iteration_bounds = array<i64: 1>, scalar_prefetch = 0 : i64, scratch_operands = 0 : i64, tpu.core_type = #tpu.core_type<tc>, window_params = [{transform_indices = @transform_0, window_bounds = array<i64: 8, 128>}, {pipeline_mode = #tpu.pipeline_mode<synchronous>, transform_indices = @transform_1, window_bounds = array<i64: 3, 128, 128>}, {pipeline_mode = #tpu.pipeline_mode<synchronous>, transform_indices = @transform_2, window_bounds = array<i64: 3, 128>}, {transform_indices = @transform_3, window_bounds = array<i64: 8, 128>}]} {
    %c0 = arith.constant 0 : index
    %c0_0 = arith.constant 0 : index
    %0 = vector.load %arg1[%c0, %c0_0] : memref<8x128xf32, #tpu.memory_space<vmem>>, vector<8x128xf32>
    %c0_1 = arith.constant 0 : index
    %c0_2 = arith.constant 0 : index
    %c0_3 = arith.constant 0 : index
    %1 = vector.load %arg2[%c0_1, %c0_2, %c0_3] : memref<3x128x128xf32, #tpu.memory_space<vmem>>, vector<1x128x128xf32>
    %2 = vector.shape_cast %1 : vector<1x128x128xf32> to vector<128x128xf32>
    %cst = arith.constant dense<0.000000e+00> : vector<8x128xf32>
    %3 = tpu.matmul %0, %2, %cst {dimension_numbers = #tpu.dot_dimension_numbers<[1], [0], [0], [1], [0, 0, 1, 1], [], []>} : vector<8x128xf32>, vector<128x128xf32>, vector<8x128xf32> -> vector<8x128xf32>
    %c0_4 = arith.constant 0 : index
    %c0_5 = arith.constant 0 : index
    %4 = vector.load %arg3[%c0_4, %c0_5] : memref<3x128xf32, #tpu.memory_space<vmem>>, vector<1x128xf32>
    %5 = vector.broadcast %4 : vector<1x128xf32> to vector<8x128xf32>
    %6 = arith.addf %3, %5 : vector<8x128xf32>
    %cst_6 = arith.constant 0.000000e+00 : f32
    %7 = vector.broadcast %cst_6 : f32 to vector<8x128xf32>
    %8 = arith.maximumf %6, %7 : vector<8x128xf32>
    %c1 = arith.constant 1 : index
    %c0_7 = arith.constant 0 : index
    %c0_8 = arith.constant 0 : index
    %9 = vector.load %arg2[%c1, %c0_7, %c0_8] : memref<3x128x128xf32, #tpu.memory_space<vmem>>, vector<1x128x128xf32>
    %10 = vector.shape_cast %9 : vector<1x128x128xf32> to vector<128x128xf32>
    %cst_9 = arith.constant dense<0.000000e+00> : vector<8x128xf32>
    %11 = tpu.matmul %8, %10, %cst_9 {dimension_numbers = #tpu.dot_dimension_numbers<[1], [0], [0], [1], [0, 0, 1, 1], [], []>} : vector<8x128xf32>, vector<128x128xf32>, vector<8x128xf32> -> vector<8x128xf32>
    %c1_10 = arith.constant 1 : index
    %c0_11 = arith.constant 0 : index
    %12 = vector.load %arg3[%c1_10, %c0_11] : memref<3x128xf32, #tpu.memory_space<vmem>>, vector<1x128xf32>
    %13 = vector.broadcast %12 : vector<1x128xf32> to vector<8x128xf32>
    %14 = arith.addf %11, %13 : vector<8x128xf32>
    %cst_12 = arith.constant 0.000000e+00 : f32
    %15 = vector.broadcast %cst_12 : f32 to vector<8x128xf32>
    %16 = arith.maximumf %14, %15 : vector<8x128xf32>
    %c2 = arith.constant 2 : index
    %c0_13 = arith.constant 0 : index
    %c0_14 = arith.constant 0 : index
    %17 = vector.load %arg2[%c2, %c0_13, %c0_14] : memref<3x128x128xf32, #tpu.memory_space<vmem>>, vector<1x128x128xf32>
    %18 = vector.shape_cast %17 : vector<1x128x128xf32> to vector<128x128xf32>
    %cst_15 = arith.constant dense<0.000000e+00> : vector<8x128xf32>
    %19 = tpu.matmul %16, %18, %cst_15 {dimension_numbers = #tpu.dot_dimension_numbers<[1], [0], [0], [1], [0, 0, 1, 1], [], []>} : vector<8x128xf32>, vector<128x128xf32>, vector<8x128xf32> -> vector<8x128xf32>
    %c2_16 = arith.constant 2 : index
    %c0_17 = arith.constant 0 : index
    %20 = vector.load %arg3[%c2_16, %c0_17] : memref<3x128xf32, #tpu.memory_space<vmem>>, vector<1x128xf32>
    %21 = vector.broadcast %20 : vector<1x128xf32> to vector<8x128xf32>
    %22 = arith.addf %19, %21 : vector<8x128xf32>
    %23 = tpu.iota {dimensions = array<i32: 1>} : vector<8x128xi32>
    %c32_i32 = arith.constant 32 : i32
    %24 = vector.broadcast %c32_i32 : i32 to vector<8x128xi32>
    %25 = arith.cmpi slt, %23, %24 : vector<8x128xi32>
    %26 = arith.negf %22 : vector<8x128xf32>
    %27 = math.exp %26 : vector<8x128xf32>
    %cst_18 = arith.constant 1.000000e+00 : f32
    %28 = vector.broadcast %cst_18 : f32 to vector<8x128xf32>
    %29 = arith.addf %28, %27 : vector<8x128xf32>
    %30 = arith.divf %28, %29 : vector<8x128xf32>
    %31 = arith.select %25, %30, %22 : vector<8x128xi1>, vector<8x128xf32>
    %c0_19 = arith.constant 0 : index
    %c0_20 = arith.constant 0 : index
    %32 = vector.load %arg4[%c0_19, %c0_20] : memref<8x128xf32, #tpu.memory_space<vmem>>, vector<8x128xf32>
    tpu.vector_store %arg4[%c0_19, %c0_20], %31 {strides = array<i32>} : memref<8x128xf32, #tpu.memory_space<vmem>>, vector<8x128xf32>,
    return
  }
  func.func @transform_0(%arg0: i32) -> (i32, i32) {
    %c0_i32 = arith.constant 0 : i32
    %c0_i32_0 = arith.constant 0 : i32
    return %arg0, %c0_i32 : i32, i32
  }
  func.func @transform_1(%arg0: i32) -> (i32, i32, i32) {
    %c0_i32 = arith.constant 0 : i32
    %c0_i32_0 = arith.constant 0 : i32
    %c0_i32_1 = arith.constant 0 : i32
    %c0_i32_2 = arith.constant 0 : i32
    return %c0_i32, %c0_i32_0, %c0_i32_1 : i32, i32, i32
  }
  func.func @transform_2(%arg0: i32) -> (i32, i32) {
    %c0_i32 = arith.constant 0 : i32
    %c0_i32_0 = arith.constant 0 : i32
    %c0_i32_1 = arith.constant 0 : i32
    return %c0_i32, %c0_i32_0 : i32, i32
  }
  func.func @transform_3(%arg0: i32) -> (i32, i32) {
    %c0_i32 = arith.constant 0 : i32
    %c0_i32_0 = arith.constant 0 : i32
    return %arg0, %c0_i32 : i32, i32
  }
}

</mosaic_0001>

<bundles_post_ra>
// kernel: actor_critic_forward.1
= control target key start
LH: loop header
LB: loop body
LE: loop exit
PB: predicated region body
PF: predicated region fallthrough
CT: control target
= control target key end

     0   :  { %8 = vsyncpa [#allocation3], 0  ;;  %s513_s12 = smov [#allocation2]   ;;  %s610_s0 = inlined_call_operand.vmem [shape: f32[8,128], index: 0, kind: input, shape index: {}]   ;;  %s611_s1 = inlined_call_operand.hbm [shape: f32[3,128,128], index: 1, kind: input, shape index: {}]   ;;  %s612_s2 = inlined_call_operand.vmem [shape: f32[3,128], index: 2, kind: input, shape index: {}]   ;;  %s613_s3 = inlined_call_operand.vmem [shape: f32[8,128], index: 3, kind: output, shape index: {}]  }
   0x1   :  { %s16_s13 = sshll.u32 %s513_s12, 4  ;;  %s17_s13 = int_to_ptr.vmem [resolvable:$true] %s16_s13 }
   0x2   :  { %s499_s14 = scalar_lea.vmem %s17_s13, 6144  ;;  %p504_p1 = scmp.lt.s32.totalorder %s17_s13, %s17_s13 }
   0x3   :  { %p500_p0 = scmp.ne.s32.totalorder %s17_s13, %s499_s14  ;;  %p505_p2 = scmp.lt.s32.totalorder %s499_s14, %s499_s14 }
   0x5   :  { %p506_p3 = por %p505_p2, %p504_p1 }
   0x7   :  { %p507_p4 = pnand %p506_p3, %p500_p0 }
   0x9   :  { %510 = shalt.err (!%p507_p4)
}
   0xa   :  { %s514_s15 = smov 128   ;;  %s515_s16 = smov 8  }
   0xb   :  { %22 = dma.hbm_to_vmem [thread:$0]  %s611_s1, 6144, %s17_s13, [#allocation3], %s514_s15, %s514_s15, %s515_s16  }
   0xc   :  { %511 = dma.done.wait [#allocation3], 6144  }
   0xd   :  { %512 = vsyncadd [#allocation3], 4294961152  ;;  %v516_v0 = vmov 0.0   ;;  %vm517_vm0 = vmmov 0   ;;  %v44_v1 = vld [vmem:[#allocation2 + $0x78] sm:$0xff]  ;;  %v43_v2 = vld [vmem:[#allocation2 + $0x70] sm:$0xff] }
   0xe   :  { %377 = vmatprep.subr.mxu0 %v516_v0  ;;  %409 = vmatprep.mubr.msk.f32.mxu0 %vm517_vm0, %v516_v0  ;;  %v42_v3 = vld [vmem:[#allocation2 + $0x68] sm:$0xff]  ;;  %v41_v4 = vld [vmem:[#allocation2 + $0x60] sm:$0xff]  ;;  %v137_v5 = vld [vmem:[#allocation2 + $0xf8] sm:$0xff] }
   0xf   :  { %412 = vmatprep.subr.mxu1 %v516_v0  ;;  %444 = vmatprep.mubr.msk.f32.mxu1 %vm517_vm0, %v516_v0  ;;  %v40_v6 = vld [vmem:[#allocation2 + $0x58] sm:$0xff]  ;;  %v136_v7 = vld [vmem:[#allocation2 + $0xf0] sm:$0xff]  ;;  %v135_v8 = vld [vmem:[#allocation2 + $0xe8] sm:$0xff] }
  0x10   :  { %378 = vmatpush3.msra.mxu0 %v44_v1  ;;  %413 = vmatpush3.msra.mxu1 %v137_v5  ;;  %v39_v9 = vld [vmem:[#allocation2 + $0x50] sm:$0xff]  ;;  %v134_v10 = vld [vmem:[#allocation2 + $0xe0] sm:$0xff]  ;;  %v38_v11 = vld [vmem:[#allocation2 + $0x48] sm:$0xff] }
  0x11   :  { %379 = vmatprep.subr.mxu0 %v516_v0  ;;  %414 = vmatprep.subr.mxu1 %v516_v0  ;;  %v133_v12 = vld [vmem:[#allocation2 + $0xd8] sm:$0xff]  ;;  %v37_v13 = vld [vmem:[#allocation2 + $0x40] sm:$0xff]  ;;  %v132_v14 = vld [vmem:[#allocation2 + $0xd0] sm:$0xff] }
  0x12   :  { %380 = vmatpush3.msra.mxu0 %v43_v2  ;;  %415 = vmatpush3.msra.mxu1 %v136_v7  ;;  %v36_v15 = vld [vmem:[#allocation2 + $0x38] sm:$0xff]  ;;  %v131_v16 = vld [vmem:[#allocation2 + $0xc8] sm:$0xff]  ;;  %v35_v17 = vld [vmem:[#allocation2 + $0x30] sm:$0xff] }
  0x13   :  { %381 = vmatprep.subr.mxu0 %v516_v0  ;;  %416 = vmatprep.subr.mxu1 %v516_v0  ;;  %v130_v18 = vld [vmem:[#allocation2 + $0xc0] sm:$0xff]  ;;  %v34_v19 = vld [vmem:[#allocation2 + $0x28] sm:$0xff]  ;;  %v129_v20 = vld [vmem:[#allocation2 + $0xb8] sm:$0xff] }
  0x14   :  { %382 = vmatpush3.msra.mxu0 %v42_v3  ;;  %417 = vmatpush3.msra.mxu1 %v135_v8  ;;  %v33_v21 = vld [vmem:[#allocation2 + $0x20] sm:$0xff]  ;;  %v128_v22 = vld [vmem:[#allocation2 + $0xb0] sm:$0xff]  ;;  %v32_v23 = vld [vmem:[#allocation2 + $0x18] sm:$0xff]  ;;  %v306_v3 = vlaneseq }
  0x15   :  { %383 = vmatprep.subr.mxu0 %v516_v0  ;;  %418 = vmatprep.subr.mxu1 %v516_v0  ;;  %v127_v24 = vld [vmem:[#allocation2 + $0xa8] sm:$0xff]  ;;  %v31_v25 = vld [vmem:[#allocation2 + $0x10] sm:$0xff]  ;;  %v126_v26 = vld [vmem:[#allocation2 + $0xa0] sm:$0xff] }
  0x16   :  { %384 = vmatpush3.msra.mxu0 %v41_v4  ;;  %419 = vmatpush3.msra.mxu1 %v134_v10  ;;  %v30_v27 = vld [vmem:[#allocation2 + $0x8] sm:$0xff]  ;;  %v125_v28 = vld [vmem:[#allocation2 + $0x98] sm:$0xff]  ;;  %v29_v29 = vld [vmem:[#allocation2] sm:$0xff]  ;;  %v307_v4 = vand.u32 127, %v306_v3 }
  0x17   :  { %385 = vmatprep.subr.mxu0 %v516_v0  ;;  %420 = vmatprep.subr.mxu1 %v516_v0  ;;  %v28_v30 = vld [vmem:[%s610_s0] sm:$0xff]  ;;  %v124_v31 = vld [vmem:[#allocation2 + $0x90] sm:$0xff]  ;;  %v123_v32 = vld [vmem:[#allocation2 + $0x88] sm:$0xff] }
  0x18   :  { %386 = vmatpush3.msra.mxu0 %v40_v6  ;;  %421 = vmatpush3.msra.mxu1 %v133_v12  ;;  %v122_v33 = vld [vmem:[#allocation2 + $0x80] sm:$0xff]  ;;  %v230_v34 = vld [vmem:[#allocation2 + $0x178] sm:$0xff]  ;;  %v229_v35 = vld [vmem:[#allocation2 + $0x170] sm:$0xff]  ;;  %vm308_vm1 = vcmp.lt.s32.totalorder %v307_v4, 32 }
  0x19   :  { %387 = vmatprep.subr.mxu0 %v516_v0  ;;  %422 = vmatprep.subr.mxu1 %v516_v0  ;;  %v228_v36 = vld [vmem:[#allocation2 + $0x168] sm:$0xff]  ;;  %v227_v37 = vld [vmem:[#allocation2 + $0x160] sm:$0xff]  ;;  %v226_v38 = vld [vmem:[#allocation2 + $0x158] sm:$0xff] }
  0x1a   :  { %388 = vmatpush3.msra.mxu0 %v39_v9  ;;  %423 = vmatpush3.msra.mxu1 %v132_v14  ;;  %v225_v39 = vld [vmem:[#allocation2 + $0x150] sm:$0xff]  ;;  %v224_v40 = vld [vmem:[#allocation2 + $0x148] sm:$0xff]  ;;  %v223_v41 = vld [vmem:[#allocation2 + $0x140] sm:$0xff] }
  0x1b   :  { %389 = vmatprep.subr.mxu0 %v516_v0  ;;  %424 = vmatprep.subr.mxu1 %v516_v0  ;;  %v222_v42 = vld [vmem:[#allocation2 + $0x138] sm:$0xff]  ;;  %v221_v43 = vld [vmem:[#allocation2 + $0x130] sm:$0xff]  ;;  %v220_v44 = vld [vmem:[#allocation2 + $0x128] sm:$0xff] }
  0x1c   :  { %390 = vmatpush3.msra.mxu0 %v38_v11  ;;  %425 = vmatpush3.msra.mxu1 %v131_v16  ;;  %v219_v45 = vld [vmem:[#allocation2 + $0x120] sm:$0xff]  ;;  %v218_v46 = vld [vmem:[#allocation2 + $0x118] sm:$0xff]  ;;  %v217_v52 = vld [vmem:[#allocation2 + $0x110] sm:$0xff] }
  0x1d   :  { %391 = vmatprep.subr.mxu0 %v516_v0  ;;  %426 = vmatprep.subr.mxu1 %v516_v0  ;;  %v322_v47 = vld [vmem:[%s612_s2] ss:$0 sm:$0xff]  ;;  %v216_v53 = vld [vmem:[#allocation2 + $0x108] sm:$0xff]  ;;  %v323_v55 = vld [vmem:[%s612_s2 + $0x1] ss:$0 sm:$0xff] }
  0x1e   :  { %392 = vmatpush3.msra.mxu0 %v37_v13  ;;  %427 = vmatpush3.msra.mxu1 %v130_v18  ;;  %v215_v54 = vld [vmem:[#allocation2 + $0x100] sm:$0xff] }
  0x1f   :  { %393 = vmatprep.subr.mxu0 %v516_v0  ;;  %428 = vmatprep.subr.mxu1 %v516_v0  ;;  %v324_v60 = vld [vmem:[%s612_s2 + $0x2] ss:$0 sm:$0xff] }
  0x20   :  { %394 = vmatpush3.msra.mxu0 %v36_v15  ;;  %429 = vmatpush3.msra.mxu1 %v129_v20 }
  0x21   :  { %395 = vmatprep.subr.mxu0 %v516_v0  ;;  %430 = vmatprep.subr.mxu1 %v516_v0 }
  0x22   :  { %396 = vmatpush3.msra.mxu0 %v35_v17  ;;  %431 = vmatpush3.msra.mxu1 %v128_v22 }
  0x23   :  { %397 = vmatprep.subr.mxu0 %v516_v0  ;;  %432 = vmatprep.subr.mxu1 %v516_v0 }
  0x24   :  { %398 = vmatpush3.msra.mxu0 %v34_v19  ;;  %433 = vmatpush3.msra.mxu1 %v127_v24 }
  0x25   :  { %399 = vmatprep.subr.mxu0 %v516_v0  ;;  %434 = vmatprep.subr.mxu1 %v516_v0 }
  0x26   :  { %400 = vmatpush3.msra.mxu0 %v33_v21  ;;  %435 = vmatpush3.msra.mxu1 %v126_v26 }
  0x27   :  { %401 = vmatprep.subr.mxu0 %v516_v0  ;;  %436 = vmatprep.subr.mxu1 %v516_v0 }
  0x28   :  { %402 = vmatpush3.msra.mxu0 %v32_v23  ;;  %437 = vmatpush3.msra.mxu1 %v125_v28 }
  0x29   :  { %403 = vmatprep.subr.mxu0 %v516_v0  ;;  %438 = vmatprep.subr.mxu1 %v516_v0 }
  0x2a   :  { %404 = vmatpush3.msra.mxu0 %v31_v25  ;;  %439 = vmatpush3.msra.mxu1 %v124_v31 }
  0x2b   :  { %405 = vmatprep.subr.mxu0 %v516_v0  ;;  %440 = vmatprep.subr.mxu1 %v516_v0 }
  0x2c   :  { %406 = vmatpush3.msra.mxu0 %v30_v27  ;;  %441 = vmatpush3.msra.mxu1 %v123_v32 }
  0x2d   :  { %407 = vmatprep.subr.mxu0 %v516_v0  ;;  %442 = vmatprep.subr.mxu1 %v516_v0 }
  0x2e   :  { %408 = vmatpush3.msra.mxu0 %v29_v29  ;;  %443 = vmatpush3.msra.mxu1 %v122_v33 }
  0x2f   :  { %410 = vmatmul.mubr.f32.vlgmr.msra.gmra.mxu0 %v28_v30  ;;  %447 = vmatprep.subr.mxu0 %v516_v0 }
  0x30   :  { %479 = vmatprep.mubr.msk.f32.mxu0 %vm517_vm0, %v516_v0  ;;  %448 = vmatpush3.msra.mxu0 %v230_v34 }
  0x31   :  { %449 = vmatprep.subr.mxu0 %v516_v0 }
  0x32   :  { %450 = vmatpush3.msra.mxu0 %v229_v35 }
  0x33   :  { %451 = vmatprep.subr.mxu0 %v516_v0 }
  0x34   :  { %452 = vmatpush3.msra.mxu0 %v228_v36 }
  0x35   :  { %453 = vmatprep.subr.mxu0 %v516_v0 }
  0x36   :  { %454 = vmatpush3.msra.mxu0 %v227_v37 }
  0x37   :  { %455 = vmatprep.subr.mxu0 %v516_v0 }
  0x38   :  { %456 = vmatpush3.msra.mxu0 %v226_v38 }
  0x39   :  { %457 = vmatprep.subr.mxu0 %v516_v0 }
  0x3a   :  { %458 = vmatpush3.msra.mxu0 %v225_v39 }
  0x3b   :  { %459 = vmatprep.subr.mxu0 %v516_v0 }
  0x3c   :  { %460 = vmatpush3.msra.mxu0 %v224_v40 }
  0x3d   :  { %461 = vmatprep.subr.mxu0 %v516_v0 }
  0x3e   :  { %462 = vmatpush3.msra.mxu0 %v223_v41 }
  0x3f   :  { %463 = vmatprep.subr.mxu0 %v516_v0 }
  0x40   :  { %464 = vmatpush3.msra.mxu0 %v222_v42 }
  0x41   :  { %465 = vmatprep.subr.mxu0 %v516_v0 }
  0x42   :  { %466 = vmatpush3.msra.mxu0 %v221_v43 }
  0x43   :  { %467 = vmatprep.subr.mxu0 %v516_v0 }
  0x44   :  { %468 = vmatpush3.msra.mxu0 %v220_v44 }
  0x45   :  { %469 = vmatprep.subr.mxu0 %v516_v0 }
  0x46   :  { %470 = vmatpush3.msra.mxu0 %v219_v45 }
  0x47   :  { %471 = vmatprep.subr.mxu0 %v516_v0 }
  0x48   :  { %472 = vmatpush3.msra.mxu0 %v218_v46 }
  0x49   :  { %473 = vmatprep.subr.mxu0 %v516_v0 }
  0x4a   :  { %474 = vmatpush3.msra.mxu0 %v217_v52 }
  0x4b   :  { %475 = vmatprep.subr.mxu0 %v516_v0 }
  0x4c   :  { %476 = vmatpush3.msra.mxu0 %v216_v53 }
  0x4d   :  { %477 = vmatprep.subr.mxu0 %v516_v0 }
  0x4e   :  { %478 = vmatpush3.msra.mxu0 %v215_v54 }
  0xef   :  { %v116_v48 = vpop.f32.mrf.mxu0 }
  0xf0   :  { %v117_v49 = vadd.f32 %v322_v47, %v116_v48 }
  0xf1   :  { %v411_v50 = vpop.f32.mrf.mxu0 }
  0xf2   :  { %v120_v51 = vmax.f32 %v117_v49, 0.0 }
  0xf4   :  { %445 = vmatmul.mubr.f32.vlgmr.msra.gmra.mxu1 %v120_v51 }
 0x1b4   :  { %v209_v56 = vpop.f32.mrf.mxu1 }
 0x1b5   :  { %v210_v57 = vadd.f32 %v323_v55, %v209_v56 }
 0x1b6   :  { %v446_v58 = vpop.f32.mrf.mxu1 }
 0x1b7   :  { %v213_v59 = vmax.f32 %v210_v57, 0.0 }
 0x1b9   :  { %480 = vmatmul.mubr.f32.vlgmr.msra.gmra.mxu0 %v213_v59 }
 0x279   :  { %v302_v61 = vpop.f32.mrf.mxu0 }
 0x27a   :  { %v303_v62 = vadd.f32 %v324_v60, %v302_v61 }
 0x27b   :  { %v481_v63 = vpop.f32.mrf.mxu0 }
 0x27c   :  { %v325_v1 = vmul.f32 -1.442695, %v303_v62 }
 0x27e   :  { %487 = vpow2.f32 %v325_v1 }
 0x28b   :  { %v488_v0 = vpop.eup %487 }
 0x28c   :  { %v312_v2 = vadd.f32 1.0, %v488_v0 }
 0x28e   :  { %489 = vrcp.f32 %v312_v2 }
 0x29b   :  { %v490_v5 = vpop.eup %489 }
 0x29c   :  { %v315_v6 = vsel %vm308_vm1, %v490_v5, %v303_v62 }
 0x29d   :  { %316 = vst [vmem:[%s613_s3] sm:$0xff] %v315_v6 }
 0x29e   :  { %321 = vsyncpa [#allocation3], 1 }

</bundles_post_ra>
